<compile_context>
chip_gen: v7x
topology: tpu7x:2x2x1
jax: 0.10.0
libtpu: 0.0.40
codegen_flags: <defaults>
</compile_context>

<pallas_src>
import jax
import jax.numpy as jnp
import numpy as np
from jax.experimental import pallas as pl
from jax.experimental.pallas import tpu as pltpu

# ----------------------------- model config ---------------------------------
FILTER_SIZES = (2, 3, 4)
FILTER_NUM = 8           # F
CLASS_NUM = 4            # C
VOCAB_SIZE = 32          # V
EMBED_DIM = 32           # E
SEQ_LEN = 12             # S
BATCH = 4                # B (logical)
DROPOUT = 0.5            # eval-mode dropout == identity

# ----------------------------- kernel layout constants ----------------------
LANES = 128                               # feature dims padded to full lane width
MAX_FSZ = max(FILTER_SIZES)
BATCH_PAD = 8                             # batch padded to 8-sublane granularity
SBP = SEQ_LEN * BATCH_PAD                 # rows of the conv activation slab (96)
TAPS_W = MAX_FSZ * VOCAB_SIZE             # one-hot slab width (= 128 here)
N_FILT = len(FILTER_SIZES) * FILTER_NUM   # 24 real feature columns
SENTINEL = -128                           # pad token id: -128 + k*V never hits a lane


def _align8(x):
    return (x + 7) // 8 * 8


# Row offsets of each segment inside the single packed weight slab (8-aligned).
OFF_WCONV = 0                                             # (TAPS_W, LANES)
OFF_BCONV = _align8(OFF_WCONV + TAPS_W)                   # (1, LANES)
OFF_MASK = _align8(OFF_BCONV + 1)                         # (SBP, LANES)
OFF_FCW = _align8(OFF_MASK + SBP)                         # (LANES, LANES)
OFF_FCB = _align8(OFF_FCW + LANES)                        # (1, LANES)
WSLAB_ROWS = _align8(OFF_FCB + 1)                         # 368 rows total


def _max_over_time(x, groups, gsize):
    """Log-depth max over `groups` row-blocks of `gsize` rows each (slices stay 8-aligned)."""
    if groups == 1:
        return x
    half = groups // 2
    a = _max_over_time(x[: half * gsize, :], half, gsize)
    b = _max_over_time(x[half * gsize:, :], groups - half, gsize)
    return jnp.maximum(a, b)


def _textcnn_kernel(ids_ref, w_ref, out_ref):
    """shifted one-hot slab -> single conv matmul -> relu/mask -> tree max-pool -> fc -> argmax."""
    # ---- one-hot slab of tap-shifted token ids (embedding folded into w_conv) ----
    # slab[t*Bp + b, k*V + v] = 1  iff  token(t + k, b) == v.  Sentinel rows are all-zero.
    lane = jax.lax.broadcasted_iota(jnp.int32, (SBP, TAPS_W), 1)
    slab = (ids_ref[0:SBP, :] == lane).astype(jnp.float32)          # tap 0 (offset 0)
    for k in range(1, MAX_FSZ):
        ids_k = ids_ref[k * BATCH_PAD: k * BATCH_PAD + SBP, :]      # (SBP, 1), 8-aligned slice
        slab = slab + (ids_k + k * VOCAB_SIZE == lane).astype(jnp.float32)

    # ---- static slices of the single packed weight slab (all 8-row aligned) ------
    w_conv = w_ref[OFF_WCONV: OFF_WCONV + TAPS_W, :]                # (128, 128)
    b_conv = w_ref[OFF_BCONV: OFF_BCONV + 1, :]                     # (1, 128)
    vmask = w_ref[OFF_MASK: OFF_MASK + SBP, :]                      # (96, 128)
    fc_w = w_ref[OFF_FCW: OFF_FCW + LANES, :]                       # (128, 128)
    fc_b = w_ref[OFF_FCB: OFF_FCB + 1, :]                           # (1, 128)

    # ---- every filter size / tap / embedding in ONE MXU matmul -------------------
    conv = jnp.dot(slab, w_conv, preferred_element_type=jnp.float32)    # (96, 128)
    # bias + ReLU, then zero-mask positions whose window overhangs the sequence
    # (safe because ReLU guarantees valid outputs >= 0).
    conv = jnp.maximum(conv + b_conv, 0.0) * vmask

    # ---- max_pool1d over the full sequence: log-depth tree over 8-row groups -----
    pooled = _max_over_time(conv, SEQ_LEN, BATCH_PAD)                   # (8, 128)

    # ---- fc (concat over filter sizes is implicit in the packed column order) ----
    # TODO(synk): nn.Dropout is eval-mode identity here (inference forward).
    logits = jnp.dot(pooled, fc_w, preferred_element_type=jnp.float32) + fc_b  # (8, 128)

    # ---- argmax(softmax(logits)) == argmax(logits): softmax dropped on purpose ---
    cidx = jax.lax.broadcasted_iota(jnp.int32, (BATCH_PAD, LANES), 1)
    m = jnp.where(cidx < CLASS_NUM, logits, -jnp.inf)
    lmax = jnp.max(m, axis=1, keepdims=True)
    pred = jnp.min(jnp.where(m >= lmax, cidx, LANES), axis=1, keepdims=True)   # (8, 1) i32

    # Single lane-dense output tile: logits in cols 0..C-1, prediction (as float) in col C.
    out_ref[...] = jnp.where(cidx == CLASS_NUM, pred.astype(jnp.float32), logits)


def pack_params(params):
    """One-time packing (outside the hot path) of everything into a single lane-dense slab."""
    wslab = np.zeros((WSLAB_ROWS, LANES), np.float32)
    vectors = np.asarray(params["vectors"], np.float32)               # (V, E)

    for i, fsz in enumerate(FILTER_SIZES):
        W = np.asarray(params[f"conv_w_{fsz}"], np.float32)           # (F, fsz, E)
        b = np.asarray(params[f"conv_b_{fsz}"], np.float32)           # (F,)
        c0 = i * FILTER_NUM
        for k in range(fsz):
            # Fold embedding into the conv weights: (V, E) @ (E, F) -> (V, F)
            wslab[OFF_WCONV + k * VOCAB_SIZE: OFF_WCONV + (k + 1) * VOCAB_SIZE,
                  c0:c0 + FILTER_NUM] = vectors @ W[:, k, :].T
        wslab[OFF_BCONV, c0:c0 + FILTER_NUM] = b
        # Static validity mask: position t is valid for this filter iff t <= S - fsz.
        T = SEQ_LEN - fsz + 1
        wslab[OFF_MASK: OFF_MASK + T * BATCH_PAD, c0:c0 + FILTER_NUM] = 1.0

    wslab[OFF_FCW: OFF_FCW + N_FILT, :CLASS_NUM] = np.asarray(params["fc_w"], np.float32)
    wslab[OFF_FCB, :CLASS_NUM] = np.asarray(params["fc_b"], np.float32)
    return jnp.asarray(wslab)


@jax.jit
def textcnn_forward(x_ids, wslab):
    """x_ids: (S, B) int token ids.  Returns (logits (B, C) f32, pred (B,) i32)."""
    S, B = x_ids.shape
    assert S == SEQ_LEN and 0 < B <= BATCH_PAD

    # Pad batch to 8 sublanes and append (max_fsz - 1) sentinel time steps so every
    # tap shift inside the kernel is a plain aligned row slice.  Row = t * BATCH_PAD + b.
    ids_p = jnp.full((S + MAX_FSZ - 1, BATCH_PAD), SENTINEL, jnp.int32)
    ids_p = ids_p.at[:S, :B].set(x_ids.astype(jnp.int32))
    ids_flat = ids_p.reshape((S + MAX_FSZ - 1) * BATCH_PAD, 1)

    vmem = pl.BlockSpec(memory_space=pltpu.MemorySpace.VMEM)
    out = pl.pallas_call(
        _textcnn_kernel,
        out_shape=jax.ShapeDtypeStruct((BATCH_PAD, LANES), jnp.float32),
        in_specs=[vmem, vmem],
        out_specs=vmem,
    )(ids_flat, wslab)

    logits = out[:B, :CLASS_NUM]
    pred = out[:B, CLASS_NUM].astype(jnp.int32)
    return logits, pred


def _reference_forward(x_ids, params):
    """Pure-JAX reference mirroring the PyTorch forward."""
    vectors = params["vectors"]
    emb = jnp.transpose(jnp.take(vectors, x_ids, axis=0), (1, 0, 2))   # (B, S, E)
    B = x_ids.shape[1]
    pooled = []
    for fsz in FILTER_SIZES:
        W = params[f"conv_w_{fsz}"]              # (F, fsz, E)
        b = params[f"conv_b_{fsz}"]              # (F,)
        T = SEQ_LEN - fsz + 1
        acc = jnp.zeros((B, T, FILTER_NUM), jnp.float32)
        for k in range(fsz):
            acc = acc + jnp.einsum('bte,fe->btf', emb[:, k:k + T, :], W[:, k, :])
        s = jax.nn.relu(acc + b[None, None, :])
        pooled.append(jnp.max(s, axis=1))
    feat = jnp.concatenate(pooled, axis=1)
    logits = feat @ params["fc_w"] + params["fc_b"]
    pred = jnp.argmax(jax.nn.softmax(logits, axis=1), axis=1).astype(jnp.int32)
    return logits, pred


def make_params(key):
    keys = jax.random.split(key, 2 * len(FILTER_SIZES) + 3)
    params = {"vectors": jax.random.normal(keys[0], (VOCAB_SIZE, EMBED_DIM), jnp.float32) * 0.5}
    for i, fsz in enumerate(FILTER_SIZES):
        params[f"conv_w_{fsz}"] = jax.random.normal(
            keys[1 + 2 * i], (FILTER_NUM, fsz, EMBED_DIM), jnp.float32) * 0.2
        params[f"conv_b_{fsz}"] = jax.random.normal(
            keys[2 + 2 * i], (FILTER_NUM,), jnp.float32) * 0.1
    params["fc_w"] = jax.random.normal(keys[-2], (N_FILT, CLASS_NUM), jnp.float32) * 0.5
    params["fc_b"] = jax.random.normal(keys[-1], (CLASS_NUM,), jnp.float32) * 0.1
    return params


if __name__ == "__main__":
    key = jax.random.PRNGKey(0)
    pkey, xkey = jax.random.split(key)
    params = make_params(pkey)
    wslab = pack_params(params)          # one-time packing, outside the hot path

    # x: (S, B) token ids, matching the PyTorch module's (seq, batch) input.
    x_ids = jax.random.randint(xkey, (SEQ_LEN, BATCH), 0, VOCAB_SIZE, dtype=jnp.int32)

    logits, pred = jax.block_until_ready(textcnn_forward(x_ids, wslab))
    ref_logits, ref_pred = _reference_forward(x_ids, params)

    # Logits must match the reference (tolerance covers MXU default-precision rounding).
    np.testing.assert_allclose(np.asarray(logits), np.asarray(ref_logits),
                               rtol=2e-2, atol=2e-2)
    # argmax(softmax(logits)) == argmax(logits); verify the in-kernel argmax exactly
    # against the kernel's own logits (tie-break = first maximal index, as jnp.argmax).
    np.testing.assert_array_equal(np.asarray(pred),
                                  np.argmax(np.asarray(logits), axis=1).astype(np.int32))
    print("KERNEL_OK")
</pallas_src>

<mosaic_0001>
module attributes {stable_mosaic.version = 11 : i64} {
  func.func @_textcnn_kernel(%arg0: memref<120x1xi32, #tpu.memory_space<vmem>>, %arg1: memref<368x128xf32, #tpu.memory_space<vmem>>, %arg2: memref<8x128xf32, #tpu.memory_space<vmem>>) attributes {dimension_semantics = [], scalar_prefetch = 0 : i64, scratch_operands = 0 : i64, tpu.core_type = #tpu.core_type<tc>} {
    %0 = tpu.iota {dimensions = array<i32: 1>} : vector<96x128xi32>
    %c0 = arith.constant 0 : index
    %c0_0 = arith.constant 0 : index
    %1 = vector.load %arg0[%c0, %c0_0] : memref<120x1xi32, #tpu.memory_space<vmem>>, vector<96x1xi32>
    %2 = vector.broadcast %1 : vector<96x1xi32> to vector<96x128xi32>
    %3 = arith.cmpi eq, %2, %0 : vector<96x128xi32>
    %4 = arith.extui %3 : vector<96x128xi1> to vector<96x128xi32>
    %5 = arith.sitofp %4 : vector<96x128xi32> to vector<96x128xf32>
    %c8 = arith.constant 8 : index
    %c0_1 = arith.constant 0 : index
    %6 = vector.load %arg0[%c8, %c0_1] : memref<120x1xi32, #tpu.memory_space<vmem>>, vector<96x1xi32>
    %c32_i32 = arith.constant 32 : i32
    %7 = vector.broadcast %c32_i32 : i32 to vector<96x1xi32>
    %8 = arith.addi %6, %7 : vector<96x1xi32>
    %9 = vector.broadcast %8 : vector<96x1xi32> to vector<96x128xi32>
    %10 = arith.cmpi eq, %9, %0 : vector<96x128xi32>
    %11 = arith.extui %10 : vector<96x128xi1> to vector<96x128xi32>
    %12 = arith.sitofp %11 : vector<96x128xi32> to vector<96x128xf32>
    %13 = arith.addf %5, %12 : vector<96x128xf32>
    %c16 = arith.constant 16 : index
    %c0_2 = arith.constant 0 : index
    %14 = vector.load %arg0[%c16, %c0_2] : memref<120x1xi32, #tpu.memory_space<vmem>>, vector<96x1xi32>
    %c64_i32 = arith.constant 64 : i32
    %15 = vector.broadcast %c64_i32 : i32 to vector<96x1xi32>
    %16 = arith.addi %14, %15 : vector<96x1xi32>
    %17 = vector.broadcast %16 : vector<96x1xi32> to vector<96x128xi32>
    %18 = arith.cmpi eq, %17, %0 : vector<96x128xi32>
    %19 = arith.extui %18 : vector<96x128xi1> to vector<96x128xi32>
    %20 = arith.sitofp %19 : vector<96x128xi32> to vector<96x128xf32>
    %21 = arith.addf %13, %20 : vector<96x128xf32>
    %c24 = arith.constant 24 : index
    %c0_3 = arith.constant 0 : index
    %22 = vector.load %arg0[%c24, %c0_3] : memref<120x1xi32, #tpu.memory_space<vmem>>, vector<96x1xi32>
    %c96_i32 = arith.constant 96 : i32
    %23 = vector.broadcast %c96_i32 : i32 to vector<96x1xi32>
    %24 = arith.addi %22, %23 : vector<96x1xi32>
    %25 = vector.broadcast %24 : vector<96x1xi32> to vector<96x128xi32>
    %26 = arith.cmpi eq, %25, %0 : vector<96x128xi32>
    %27 = arith.extui %26 : vector<96x128xi1> to vector<96x128xi32>
    %28 = arith.sitofp %27 : vector<96x128xi32> to vector<96x128xf32>
    %29 = arith.addf %21, %28 : vector<96x128xf32>
    %c0_4 = arith.constant 0 : index
    %c0_5 = arith.constant 0 : index
    %30 = vector.load %arg1[%c0_4, %c0_5] : memref<368x128xf32, #tpu.memory_space<vmem>>, vector<128x128xf32>
    %c128 = arith.constant 128 : index
    %c0_6 = arith.constant 0 : index
    %31 = vector.load %arg1[%c128, %c0_6] : memref<368x128xf32, #tpu.memory_space<vmem>>, vector<1x128xf32>
    %c136 = arith.constant 136 : index
    %c0_7 = arith.constant 0 : index
    %32 = vector.load %arg1[%c136, %c0_7] : memref<368x128xf32, #tpu.memory_space<vmem>>, vector<96x128xf32>
    %c232 = arith.constant 232 : index
    %c0_8 = arith.constant 0 : index
    %33 = vector.load %arg1[%c232, %c0_8] : memref<368x128xf32, #tpu.memory_space<vmem>>, vector<128x128xf32>
    %c360 = arith.constant 360 : index
    %c0_9 = arith.constant 0 : index
    %34 = vector.load %arg1[%c360, %c0_9] : memref<368x128xf32, #tpu.memory_space<vmem>>, vector<1x128xf32>
    %cst = arith.constant dense<0.000000e+00> : vector<96x128xf32>
    %35 = tpu.matmul %29, %30, %cst {dimension_numbers = #tpu.dot_dimension_numbers<[1], [0], [0], [1], [0, 0, 1, 1], [], []>} : vector<96x128xf32>, vector<128x128xf32>, vector<96x128xf32> -> vector<96x128xf32>
    %36 = vector.broadcast %31 : vector<1x128xf32> to vector<96x128xf32>
    %37 = arith.addf %35, %36 : vector<96x128xf32>
    %cst_10 = arith.constant 0.000000e+00 : f32
    %38 = vector.broadcast %cst_10 : f32 to vector<96x128xf32>
    %39 = arith.maximumf %37, %38 : vector<96x128xf32>
    %40 = arith.mulf %39, %32 : vector<96x128xf32>
    %41 = vector.extract_strided_slice %40 {offsets = [0, 0], sizes = [48, 128], strides = [1, 1]} : vector<96x128xf32> to vector<48x128xf32>
    %42 = vector.extract_strided_slice %41 {offsets = [0, 0], sizes = [24, 128], strides = [1, 1]} : vector<48x128xf32> to vector<24x128xf32>
    %43 = vector.extract_strided_slice %42 {offsets = [0, 0], sizes = [8, 128], strides = [1, 1]} : vector<24x128xf32> to vector<8x128xf32>
    %44 = vector.extract_strided_slice %42 {offsets = [8, 0], sizes = [16, 128], strides = [1, 1]} : vector<24x128xf32> to vector<16x128xf32>
    %45 = vector.extract_strided_slice %44 {offsets = [0, 0], sizes = [8, 128], strides = [1, 1]} : vector<16x128xf32> to vector<8x128xf32>
    %46 = vector.extract_strided_slice %44 {offsets = [8, 0], sizes = [8, 128], strides = [1, 1]} : vector<16x128xf32> to vector<8x128xf32>
    %47 = arith.maximumf %45, %46 : vector<8x128xf32>
    %48 = arith.maximumf %43, %47 : vector<8x128xf32>
    %49 = vector.extract_strided_slice %41 {offsets = [24, 0], sizes = [24, 128], strides = [1, 1]} : vector<48x128xf32> to vector<24x128xf32>
    %50 = vector.extract_strided_slice %49 {offsets = [0, 0], sizes = [8, 128], strides = [1, 1]} : vector<24x128xf32> to vector<8x128xf32>
    %51 = vector.extract_strided_slice %49 {offsets = [8, 0], sizes = [16, 128], strides = [1, 1]} : vector<24x128xf32> to vector<16x128xf32>
    %52 = vector.extract_strided_slice %51 {offsets = [0, 0], sizes = [8, 128], strides = [1, 1]} : vector<16x128xf32> to vector<8x128xf32>
    %53 = vector.extract_strided_slice %51 {offsets = [8, 0], sizes = [8, 128], strides = [1, 1]} : vector<16x128xf32> to vector<8x128xf32>
    %54 = arith.maximumf %52, %53 : vector<8x128xf32>
    %55 = arith.maximumf %50, %54 : vector<8x128xf32>
    %56 = arith.maximumf %48, %55 : vector<8x128xf32>
    %57 = vector.extract_strided_slice %40 {offsets = [48, 0], sizes = [48, 128], strides = [1, 1]} : vector<96x128xf32> to vector<48x128xf32>
    %58 = vector.extract_strided_slice %57 {offsets = [0, 0], sizes = [24, 128], strides = [1, 1]} : vector<48x128xf32> to vector<24x128xf32>
    %59 = vector.extract_strided_slice %58 {offsets = [0, 0], sizes = [8, 128], strides = [1, 1]} : vector<24x128xf32> to vector<8x128xf32>
    %60 = vector.extract_strided_slice %58 {offsets = [8, 0], sizes = [16, 128], strides = [1, 1]} : vector<24x128xf32> to vector<16x128xf32>
    %61 = vector.extract_strided_slice %60 {offsets = [0, 0], sizes = [8, 128], strides = [1, 1]} : vector<16x128xf32> to vector<8x128xf32>
    %62 = vector.extract_strided_slice %60 {offsets = [8, 0], sizes = [8, 128], strides = [1, 1]} : vector<16x128xf32> to vector<8x128xf32>
    %63 = arith.maximumf %61, %62 : vector<8x128xf32>
    %64 = arith.maximumf %59, %63 : vector<8x128xf32>
    %65 = vector.extract_strided_slice %57 {offsets = [24, 0], sizes = [24, 128], strides = [1, 1]} : vector<48x128xf32> to vector<24x128xf32>
    %66 = vector.extract_strided_slice %65 {offsets = [0, 0], sizes = [8, 128], strides = [1, 1]} : vector<24x128xf32> to vector<8x128xf32>
    %67 = vector.extract_strided_slice %65 {offsets = [8, 0], sizes = [16, 128], strides = [1, 1]} : vector<24x128xf32> to vector<16x128xf32>
    %68 = vector.extract_strided_slice %67 {offsets = [0, 0], sizes = [8, 128], strides = [1, 1]} : vector<16x128xf32> to vector<8x128xf32>
    %69 = vector.extract_strided_slice %67 {offsets = [8, 0], sizes = [8, 128], strides = [1, 1]} : vector<16x128xf32> to vector<8x128xf32>
    %70 = arith.maximumf %68, %69 : vector<8x128xf32>
    %71 = arith.maximumf %66, %70 : vector<8x128xf32>
    %72 = arith.maximumf %64, %71 : vector<8x128xf32>
    %73 = arith.maximumf %56, %72 : vector<8x128xf32>
    %cst_11 = arith.constant dense<0.000000e+00> : vector<8x128xf32>
    %74 = tpu.matmul %73, %33, %cst_11 {dimension_numbers = #tpu.dot_dimension_numbers<[1], [0], [0], [1], [0, 0, 1, 1], [], []>} : vector<8x128xf32>, vector<128x128xf32>, vector<8x128xf32> -> vector<8x128xf32>
    %75 = vector.broadcast %34 : vector<1x128xf32> to vector<8x128xf32>
    %76 = arith.addf %74, %75 : vector<8x128xf32>
    %77 = tpu.iota {dimensions = array<i32: 1>} : vector<8x128xi32>
    %c4_i32 = arith.constant 4 : i32
    %78 = vector.broadcast %c4_i32 : i32 to vector<8x128xi32>
    %79 = arith.cmpi slt, %77, %78 : vector<8x128xi32>
    %cst_12 = arith.constant 0xFF800000 : f32
    %80 = vector.broadcast %cst_12 : f32 to vector<8x128xf32>
    %81 = arith.select %79, %76, %80 : vector<8x128xi1>, vector<8x128xf32>
    %cst_13 = arith.constant dense<0xFF800000> : vector<8xf32>
    %82 = vector.multi_reduction <maximumf>, %81, %cst_13 [1] : vector<8x128xf32> to vector<8xf32>
    %83 = vector.shape_cast %82 : vector<8xf32> to vector<8x1xf32>
    %84 = vector.broadcast %83 : vector<8x1xf32> to vector<8x128xf32>
    %85 = arith.cmpf oge, %81, %84 : vector<8x128xf32>
    %c128_i32 = arith.constant 128 : i32
    %86 = vector.broadcast %c128_i32 : i32 to vector<8x128xi32>
    %87 = arith.select %85, %77, %86 : vector<8x128xi1>, vector<8x128xi32>
    %cst_14 = arith.constant dense<2147483647> : vector<8xi32>
    %88 = vector.multi_reduction <minsi>, %87, %cst_14 [1] : vector<8x128xi32> to vector<8xi32>
    %89 = vector.shape_cast %88 : vector<8xi32> to vector<8x1xi32>
    %c4_i32_15 = arith.constant 4 : i32
    %90 = vector.broadcast %c4_i32_15 : i32 to vector<8x128xi32>
    %91 = arith.cmpi eq, %77, %90 : vector<8x128xi32>
    %92 = arith.sitofp %89 : vector<8x1xi32> to vector<8x1xf32>
    %93 = vector.shape_cast %92 : vector<8x1xf32> to vector<8x1xf32>
    %94 = vector.broadcast %93 : vector<8x1xf32> to vector<8x128xf32>
    %95 = arith.select %91, %94, %76 : vector<8x128xi1>, vector<8x128xf32>
    %c0_16 = arith.constant 0 : index
    %c0_17 = arith.constant 0 : index
    %96 = vector.load %arg2[%c0_16, %c0_17] : memref<8x128xf32, #tpu.memory_space<vmem>>, vector<8x128xf32>
    tpu.vector_store %arg2[%c0_16, %c0_17], %95 {strides = array<i32>} : memref<8x128xf32, #tpu.memory_space<vmem>>, vector<8x128xf32>,
    return
  }
}

</mosaic_0001>

<bundles_post_ra>
// kernel: textcnn_forward.1
= control target key start
LH: loop header
LB: loop body
LE: loop exit
PB: predicated region body
PF: predicated region fallthrough
CT: control target
= control target key end

     0   :  { %7 = vsyncpa [#allocation3], 0  ;;  %s1017_s9 = smov [#allocation2]   ;;  %s1201_s0 = inlined_call_operand.vmem [shape: s32[120,1], index: 0, kind: input, shape index: {}]   ;;  %s1202_s1 = inlined_call_operand.hbm [shape: f32[368,128], index: 1, kind: input, shape index: {}]   ;;  %s1203_s2 = inlined_call_operand.vmem [shape: f32[8,128], index: 2, kind: output, shape index: {}]  }
   0x1   :  { %s15_s10 = sshll.u32 %s1017_s9, 4  ;;  %s993_s13 = scalar_lea.hbm %s1202_s1, 5888  ;;  %s16_s10 = int_to_ptr.vmem [resolvable:$true] %s15_s10 }
   0x2   :  { %p994_p0 = scmp.ne.s32.totalorder %s1202_s1, %s993_s13  ;;  %p997_p1 = scmp.lt.u32.totalorder %s993_s13, %s1202_s1 }
   0x4   :  { %p999_p2 = pnand %p997_p1, %p994_p0 }
   0x6   :  { %1002 = shalt.err (!%p999_p2)
}
   0x7   :  { %s1003_s18 = scalar_lea.vmem %s16_s10, 5888  ;;  %p1008_p4 = scmp.lt.s32.totalorder %s16_s10, %s16_s10 }
   0x8   :  { %p1004_p3 = scmp.ne.s32.totalorder %s16_s10, %s1003_s18  ;;  %p1009_p5 = scmp.lt.s32.totalorder %s1003_s18, %s1003_s18 }
   0xa   :  { %p1010_p6 = por %p1009_p5, %p1008_p4 }
   0xc   :  { %p1011_p7 = pnand %p1010_p6, %p1004_p3 }
   0xe   :  { %1014 = shalt.err (!%p1011_p7)
}
   0xf   :  { %s1018_s19 = smov 128   ;;  %s1019_s20 = smov 8  }
  0x10   :  { %21 = dma.hbm_to_vmem [thread:$0]  %s1202_s1, 5888, %s16_s10, [#allocation3], %s1018_s19, %s1018_s19, %s1019_s20  }
  0x11   :  { %1015 = dma.done.wait [#allocation3], 5888  }
  0x12   :  { %1016 = vsyncadd [#allocation3], 4294961408  ;;  %v1020_v0 = vmov 0   ;;  %v28_v1 = vld [vmem:[%s1201_s0 + $0x8] sm:$0xff]  ;;  %v27_v2 = vld [vmem:[%s1201_s0] sm:$0xff] }
  0x13   :  { %992 = vset.pattern.permute.xlu1 %v1020_v0  ;;  %991 = vset.pattern.permute.xlu0 %v1020_v0  ;;  %v112_v3 = vld [vmem:[%s1201_s0 + $0x10] sm:$0xff]  ;;  %v123_v5 = vadd.s32 32, %v28_v1  ;;  %v220_v6 = vld [vmem:[%s1201_s0 + $0x18] sm:$0xff]  ;;  %v435_v9 = vld [vmem:[#allocation2] sm:$0xff] }
  0x14   :  { %43 = vperm.xlu1 %992, %v28_v1   ;;  %40 = vperm.xlu0 %991, %v27_v2   ;;  %v124_v4 = vadd.s32 32, %v112_v3  ;;  %v232_v7 = vadd.s32 64, %v220_v6  ;;  %v231_v8 = vadd.s32 64, %v112_v3  ;;  %v436_v10 = vld [vmem:[#allocation2 + $0x8] sm:$0xff]  ;;  %v437_v11 = vld [vmem:[#allocation2 + $0x10] sm:$0xff]  ;;  %v438_v12 = vld [vmem:[#allocation2 + $0x18] sm:$0xff] }
  0x15   :  { %v125_v13 = vadd.s32 32, %v220_v6  ;;  %v928_v14 = vpack.c.bf16 %v436_v10, %v435_v9  ;;  %v932_v15 = vpack.c.bf16 %v438_v12, %v437_v11  ;;  %v439_v16 = vld [vmem:[#allocation2 + $0x20] sm:$0xff]  ;;  %v440_v17 = vld [vmem:[#allocation2 + $0x28] sm:$0xff]  ;;  %v339_v18 = vadd.s32 96, %v220_v6  ;;  %v441_v21 = vld [vmem:[#allocation2 + $0x30] sm:$0xff] }
  0x16   :  { %v328_v19 = vld [vmem:[%s1201_s0 + $0x20] sm:$0xff]  ;;  %v936_v20 = vpack.c.bf16 %v440_v17, %v439_v16  ;;  %v442_v22 = vld [vmem:[#allocation2 + $0x38] sm:$0xff]  ;;  %v222_v25 = vld [vmem:[%s1201_s0 + $0x28] sm:$0xff] }
  0x17   :  { %929 = vmatprep.subr.bf16.mxu0 %v928_v14  ;;  %v340_v23 = vadd.s32 96, %v328_v19  ;;  %v126_v24 = vadd.s32 32, %v328_v19  ;;  %v940_v26 = vpack.c.bf16 %v442_v22, %v441_v21  ;;  %v443_v27 = vld [vmem:[#allocation2 + $0x40] sm:$0xff]  ;;  %v444_v28 = vld [vmem:[#allocation2 + $0x48] sm:$0xff]  ;;  %v234_v29 = vadd.s32 64, %v222_v25  ;;  %v445_v32 = vld [vmem:[#allocation2 + $0x50] sm:$0xff] }
  0x18   :  { %139 = vperm.xlu1 %992, %v124_v4   ;;  %136 = vperm.xlu0 %991, %v123_v5   ;;  %v233_v30 = vadd.s32 64, %v328_v19  ;;  %v944_v31 = vpack.c.bf16 %v444_v28, %v443_v27  ;;  %v446_v33 = vld [vmem:[#allocation2 + $0x58] sm:$0xff]  ;;  %v127_v34 = vadd.s32 32, %v222_v25  ;;  %v447_v36 = vld [vmem:[#allocation2 + $0x60] sm:$0xff]  ;;  %v448_v37 = vld [vmem:[#allocation2 + $0x68] sm:$0xff]  ;;  %v341_v38 = vadd.s32 96, %v222_v25 }
  0x19   :  { %931 = vmatpush3.bf16.msra.mxu0 %v928_v14  ;;  %v948_v35 = vpack.c.bf16 %v446_v33, %v445_v32  ;;  %v330_v39 = vld [vmem:[%s1201_s0 + $0x30] sm:$0xff]  ;;  %v952_v40 = vpack.c.bf16 %v448_v37, %v447_v36  ;;  %v450_v42 = vld [vmem:[#allocation2 + $0x78] sm:$0xff]  ;;  %v332_v51 = vld [vmem:[%s1201_s0 + $0x40] sm:$0xff]  ;;  %v25_v14 = vlaneseq }
  0x1a   :  { %933 = vmatprep.subr.bf16.mxu0 %v932_v15  ;;  %v449_v41 = vld [vmem:[#allocation2 + $0x70] sm:$0xff]  ;;  %v342_v43 = vadd.s32 96, %v330_v39  ;;  %v128_v44 = vadd.s32 32, %v330_v39  ;;  %v224_v45 = vld [vmem:[%s1201_s0 + $0x38] sm:$0xff]  ;;  %v235_v48 = vadd.s32 64, %v330_v39  ;;  %v344_v52 = vadd.s32 96, %v332_v51 }
  0x1b   :  { %v956_v46 = vpack.c.bf16 %v450_v42, %v449_v41  ;;  %v236_v47 = vadd.s32 64, %v224_v45  ;;  %v129_v49 = vadd.s32 32, %v224_v45  ;;  %v343_v50 = vadd.s32 96, %v224_v45  ;;  %v226_v54 = vld [vmem:[%s1201_s0 + $0x48] sm:$0xff]  ;;  %v334_v59 = vld [vmem:[%s1201_s0 + $0x50] sm:$0xff]  ;;  %v228_v62 = vld [vmem:[%s1201_s0 + $0x58] sm:$0xff] }
  0x1c   :  { %247 = vperm.xlu1 %992, %v232_v7   ;;  %244 = vperm.xlu0 %991, %v231_v8   ;;  %v130_v53 = vadd.s32 32, %v332_v51  ;;  %v238_v55 = vadd.s32 64, %v226_v54  ;;  %v237_v56 = vadd.s32 64, %v332_v51  ;;  %v131_v57 = vadd.s32 32, %v226_v54  ;;  %v338_v9 = vld [vmem:[%s1201_s0 + $0x70] sm:$0xff] }
  0x1d   :  { %935 = vmatpush3.bf16.msra.mxu0 %v932_v15  ;;  %v345_v58 = vadd.s32 96, %v226_v54  ;;  %v346_v60 = vadd.s32 96, %v334_v59  ;;  %v132_v61 = vadd.s32 32, %v334_v59  ;;  %v240_v63 = vadd.s32 64, %v228_v62 }
  0x1e   :  { %937 = vmatprep.subr.bf16.mxu0 %v936_v20  ;;  %v239_v0 = vadd.s32 64, %v334_v59  ;;  %v133_v1 = vadd.s32 32, %v228_v62  ;;  %v347_v2 = vadd.s32 96, %v228_v62  ;;  %v350_v10 = vadd.s32 96, %v338_v9 }
  0x1f   :  { %v1096_v17 = vand.u32 127, %v25_v14 }
  0x20   :  { %142 = vperm.xlu1 %992, %v125_v13   ;;  %46 = vperm.xlu0 %991, %v112_v3   ;;  %v336_v3 = vld [vmem:[%s1201_s0 + $0x60] sm:$0xff] }
  0x21   :  { %939 = vmatpush3.bf16.msra.mxu0 %v936_v20  ;;  %v348_v4 = vadd.s32 96, %v336_v3  ;;  %v134_v5 = vadd.s32 32, %v336_v3  ;;  %v241_v8 = vadd.s32 64, %v336_v3  ;;  %v1021_v20 = vmov 0.0  }
  0x22   :  { %941 = vmatprep.subr.bf16.mxu0 %v940_v26 }
  0x24   :  { %49 = vperm.xlu1 %992, %v220_v6   ;;  %352 = vperm.xlu0 %991, %v339_v18   ;;  %v230_v6 = vld [vmem:[%s1201_s0 + $0x68] sm:$0xff] }
  0x25   :  { %943 = vmatpush3.bf16.msra.mxu0 %v940_v26  ;;  %v242_v7 = vadd.s32 64, %v230_v6  ;;  %v349_v11 = vadd.s32 96, %v230_v6 }
  0x26   :  { %945 = vmatprep.subr.bf16.mxu0 %v944_v31 }
  0x28   :  { %355 = vperm.xlu1 %992, %v340_v23   ;;  %145 = vperm.xlu0 %991, %v126_v24  }
  0x29   :  { %947 = vmatpush3.bf16.msra.mxu0 %v944_v31 }
  0x2a   :  { %949 = vmatprep.subr.bf16.mxu0 %v948_v35 }
  0x2c   :  { %253 = vperm.xlu1 %992, %v234_v29   ;;  %250 = vperm.xlu0 %991, %v233_v30  }
  0x2d   :  { %951 = vmatpush3.bf16.msra.mxu0 %v948_v35 }
  0x2e   :  { %953 = vmatprep.subr.bf16.mxu0 %v952_v40 }
  0x30   :  { %148 = vperm.xlu1 %992, %v127_v34   ;;  %52 = vperm.xlu0 %991, %v328_v19  }
  0x31   :  { %955 = vmatpush3.bf16.msra.mxu0 %v952_v40 }
  0x32   :  { %957 = vmatprep.subr.bf16.mxu0 %v956_v46 }
  0x34   :  { %55 = vperm.xlu1 %992, %v222_v25   ;;  %358 = vperm.xlu0 %991, %v341_v38  }
  0x35   :  { %959 = vmatpush3.bf16.msra.mxu0 %v956_v46 }
  0x38   :  { %361 = vperm.xlu1 %992, %v342_v43   ;;  %151 = vperm.xlu0 %991, %v128_v44  }
  0x3c   :  { %259 = vperm.xlu1 %992, %v236_v47   ;;  %256 = vperm.xlu0 %991, %v235_v48  }
  0x40   :  { %154 = vperm.xlu1 %992, %v129_v49   ;;  %58 = vperm.xlu0 %991, %v330_v39  }
  0x44   :  { %61 = vperm.xlu1 %992, %v224_v45   ;;  %364 = vperm.xlu0 %991, %v343_v50  }
  0x48   :  { %367 = vperm.xlu1 %992, %v344_v52   ;;  %157 = vperm.xlu0 %991, %v130_v53  }
  0x4c   :  { %265 = vperm.xlu1 %992, %v238_v55   ;;  %262 = vperm.xlu0 %991, %v237_v56  }
  0x50   :  { %160 = vperm.xlu1 %992, %v131_v57   ;;  %64 = vperm.xlu0 %991, %v332_v51  }
  0x54   :  { %67 = vperm.xlu1 %992, %v226_v54   ;;  %370 = vperm.xlu0 %991, %v345_v58  }
  0x58   :  { %373 = vperm.xlu1 %992, %v346_v60   ;;  %163 = vperm.xlu0 %991, %v132_v61  }
  0x5c   :  { %271 = vperm.xlu1 %992, %v240_v63   ;;  %268 = vperm.xlu0 %991, %v239_v0  }
  0x60   :  { %166 = vperm.xlu1 %992, %v133_v1   ;;  %70 = vperm.xlu0 %991, %v334_v59  }
  0x64   :  { %73 = vperm.xlu1 %992, %v228_v62   ;;  %376 = vperm.xlu0 %991, %v347_v2  }
  0x68   :  { %379 = vperm.xlu1 %992, %v348_v4   ;;  %169 = vperm.xlu0 %991, %v134_v5  }
  0x6c   :  { %277 = vperm.xlu1 %992, %v242_v7   ;;  %274 = vperm.xlu0 %991, %v241_v8  }
  0x70   :  { %385 = vperm.xlu1 %992, %v350_v10   ;;  %382 = vperm.xlu0 %991, %v349_v11  }
  0x93   :  { %v44_v12 = vpop.permute.xlu1 %43  ;;  %v41_v13 = vpop.permute.xlu0 %40 }
  0x94   :  { %vm75_vm1 = vcmp.eq.s32.totalorder %v41_v13, %v1096_v17  ;;  %vm76_vm4 = vcmp.eq.s32.totalorder %v44_v12, %v1096_v17 }
  0x95   :  { %v748_v24 = vsel %vm75_vm1, 1.0, %v1021_v20  ;;  %v749_v31 = vsel %vm76_vm4, 1.0, %v1021_v20 }
  0x97   :  { %v140_v15 = vpop.permute.xlu1 %139  ;;  %v137_v16 = vpop.permute.xlu0 %136 }
  0x98   :  { %vm171_vm0 = vcmp.eq.s32.totalorder %v137_v16, %v1096_v17  ;;  %vm172_vm3 = vcmp.eq.s32.totalorder %v140_v15, %v1096_v17 }
  0x99   :  { %v760_v21 = vsel %vm171_vm0, 1.0, %v1021_v20  ;;  %v761_v27 = vsel %vm172_vm3, 1.0, %v1021_v20 }
  0x9a   :  { %v207_v26 = vadd.f32 %v760_v21, %v748_v24  ;;  %v208_v34 = vadd.f32 %v761_v27, %v749_v31 }
  0x9b   :  { %v248_v18 = vpop.permute.xlu1 %247  ;;  %v245_v19 = vpop.permute.xlu0 %244 }
  0x9c   :  { %vm279_vm2 = vcmp.eq.s32.totalorder %v245_v19, %v1096_v17  ;;  %vm280_vm5 = vcmp.eq.s32.totalorder %v248_v18, %v1096_v17 }
  0x9d   :  { %v772_v25 = vsel %vm279_vm2, 1.0, %v1021_v20  ;;  %v773_v32 = vsel %vm280_vm5, 1.0, %v1021_v20 }
  0x9e   :  { %v315_v30 = vadd.f32 %v772_v25, %v207_v26  ;;  %v316_v38 = vadd.f32 %v773_v32, %v208_v34 }
  0x9f   :  { %v143_v22 = vpop.permute.xlu1 %142  ;;  %v47_v23 = vpop.permute.xlu0 %46 }
  0xa0   :  { %vm173_vm8 = vcmp.eq.s32.totalorder %v143_v22, %v1096_v17  ;;  %vm77_vm9 = vcmp.eq.s32.totalorder %v47_v23, %v1096_v17 }
  0xa1   :  { %v762_v43 = vsel %vm173_vm8, 1.0, %v1021_v20  ;;  %v750_v44 = vsel %vm77_vm9, 1.0, %v1021_v20 }
  0xa2   :  { %v209_v48 = vadd.f32 %v762_v43, %v750_v44 }
  0xa3   :  { %v50_v28 = vpop.permute.xlu1 %49  ;;  %v353_v29 = vpop.permute.xlu0 %352 }
  0xa4   :  { %vm387_vm6 = vcmp.eq.s32.totalorder %v353_v29, %v1096_v17  ;;  %vm78_vm12 = vcmp.eq.s32.totalorder %v50_v28, %v1096_v17 }
  0xa5   :  { %v784_v33 = vsel %vm387_vm6, 1.0, %v1021_v20  ;;  %v751_v53 = vsel %vm78_vm12, 1.0, %v1021_v20 }
  0xa6   :  { %v423_v35 = vadd.f32 %v784_v33, %v315_v30 }
  0xa7   :  { %v356_v36 = vpop.permute.xlu1 %355  ;;  %v146_v37 = vpop.permute.xlu0 %145 }
  0xa8   :  { %vm388_vm7 = vcmp.eq.s32.totalorder %v356_v36, %v1096_v17  ;;  %875 = vmatprep.mubr.f32.mxu0 %v423_v35  ;;  %vm174_vm11 = vcmp.eq.s32.totalorder %v146_v37, %v1096_v17 }
  0xa9   :  { %v785_v39 = vsel %vm388_vm7, 1.0, %v1021_v20  ;;  %v763_v49 = vsel %vm174_vm11, 1.0, %v1021_v20 }
  0xaa   :  { %v424_v40 = vadd.f32 %v785_v39, %v316_v38  ;;  %v210_v56 = vadd.f32 %v763_v49, %v751_v53 }
  0xab   :  { %v254_v41 = vpop.permute.xlu1 %253  ;;  %v251_v42 = vpop.permute.xlu0 %250 }
  0xac   :  { %876 = vmatmul.mubr.f32.vlgmr.msra.gmra.mrb[0].mxu0 %v424_v40  ;;  %vm281_vm10 = vcmp.eq.s32.totalorder %v251_v42, %v1096_v17  ;;  %vm282_vm13 = vcmp.eq.s32.totalorder %v254_v41, %v1096_v17 }
  0xad   :  { %v774_v47 = vsel %vm281_vm10, 1.0, %v1021_v20  ;;  %v775_v54 = vsel %vm282_vm13, 1.0, %v1021_v20 }
  0xae   :  { %v317_v52 = vadd.f32 %v774_v47, %v209_v48  ;;  %v318_v60 = vadd.f32 %v775_v54, %v210_v56 }
  0xaf   :  { %v149_v45 = vpop.permute.xlu1 %148  ;;  %v53_v46 = vpop.permute.xlu0 %52 }
  0xb0   :  { %vm175_vm0 = vcmp.eq.s32.totalorder %v149_v45, %v1096_v17  ;;  %vm79_vm1 = vcmp.eq.s32.totalorder %v53_v46, %v1096_v17 }
  0xb1   :  { %v764_v1 = vsel %vm175_vm0, 1.0, %v1021_v20  ;;  %v752_v2 = vsel %vm79_vm1, 1.0, %v1021_v20 }
  0xb2   :  { %v211_v6 = vadd.f32 %v764_v1, %v752_v2 }
  0xb3   :  { %v56_v50 = vpop.permute.xlu1 %55  ;;  %v359_v51 = vpop.permute.xlu0 %358 }
  0xb4   :  { %vm389_vm14 = vcmp.eq.s32.totalorder %v359_v51, %v1096_v17  ;;  %vm80_vm4 = vcmp.eq.s32.totalorder %v56_v50, %v1096_v17 }
  0xb5   :  { %v786_v55 = vsel %vm389_vm14, 1.0, %v1021_v20  ;;  %v753_v11 = vsel %vm80_vm4, 1.0, %v1021_v20 }
  0xb6   :  { %v425_v57 = vadd.f32 %v786_v55, %v317_v52 }
  0xb7   :  { %v362_v58 = vpop.permute.xlu1 %361  ;;  %v152_v59 = vpop.permute.xlu0 %151 }
  0xb8   :  { %vm390_vm15 = vcmp.eq.s32.totalorder %v362_v58, %v1096_v17  ;;  %878 = vmatprep.mubr.f32.mxu0 %v425_v57  ;;  %vm176_vm3 = vcmp.eq.s32.totalorder %v152_v59, %v1096_v17 }
  0xb9   :  { %v787_v61 = vsel %vm390_vm15, 1.0, %v1021_v20  ;;  %v765_v7 = vsel %vm176_vm3, 1.0, %v1021_v20 }
  0xba   :  { %v426_v62 = vadd.f32 %v787_v61, %v318_v60  ;;  %v212_v14 = vadd.f32 %v765_v7, %v753_v11 }
  0xbb   :  { %v260_v63 = vpop.permute.xlu1 %259  ;;  %v257_v0 = vpop.permute.xlu0 %256 }
  0xbc   :  { %879 = vmatmul.mubr.f32.gmra.mrb[2].mxu0 %v426_v62  ;;  %vm283_vm2 = vcmp.eq.s32.totalorder %v257_v0, %v1096_v17  ;;  %vm284_vm5 = vcmp.eq.s32.totalorder %v260_v63, %v1096_v17 }
  0xbd   :  { %v776_v5 = vsel %vm283_vm2, 1.0, %v1021_v20  ;;  %v777_v12 = vsel %vm284_vm5, 1.0, %v1021_v20 }
  0xbe   :  { %v319_v10 = vadd.f32 %v776_v5, %v211_v6  ;;  %v320_v19 = vadd.f32 %v777_v12, %v212_v14 }
  0xbf   :  { %v155_v3 = vpop.permute.xlu1 %154  ;;  %v59_v4 = vpop.permute.xlu0 %58 }
  0xc0   :  { %vm177_vm8 = vcmp.eq.s32.totalorder %v155_v3, %v1096_v17  ;;  %vm81_vm9 = vcmp.eq.s32.totalorder %v59_v4, %v1096_v17 }
  0xc1   :  { %v766_v25 = vsel %vm177_vm8, 1.0, %v1021_v20  ;;  %v754_v26 = vsel %vm81_vm9, 1.0, %v1021_v20 }
  0xc2   :  { %v213_v30 = vadd.f32 %v766_v25, %v754_v26  ;;  %v466_v25 = vld [vmem:[#allocation2 + $0xf8] sm:$0xff]  ;;  %v1022_v26 = vmov 0.0|0.0  }
  0xc3   :  { %v62_v8 = vpop.permute.xlu1 %61  ;;  %v365_v9 = vpop.permute.xlu0 %364  ;;  %960 = vmatprep.subr.bf16.mxu1 %v1022_v26 }
  0xc4   :  { %vm391_vm6 = vcmp.eq.s32.totalorder %v365_v9, %v1096_v17  ;;  %vm82_vm12 = vcmp.eq.s32.totalorder %v62_v8, %v1096_v17 }
  0xc5   :  { %v788_v13 = vsel %vm391_vm6, 1.0, %v1021_v20  ;;  %v755_v35 = vsel %vm82_vm12, 1.0, %v1021_v20 }
  0xc6   :  { %v427_v15 = vadd.f32 %v788_v13, %v319_v10 }
  0xc7   :  { %v368_v16 = vpop.permute.xlu1 %367  ;;  %v158_v18 = vpop.permute.xlu0 %157 }
  0xc8   :  { %vm392_vm7 = vcmp.eq.s32.totalorder %v368_v16, %v1096_v17  ;;  %881 = vmatprep.mubr.f32.mxu0 %v427_v15  ;;  %vm178_vm11 = vcmp.eq.s32.totalorder %v158_v18, %v1096_v17 }
  0xc9   :  { %v789_v21 = vsel %vm392_vm7, 1.0, %v1021_v20  ;;  %v767_v31 = vsel %vm178_vm11, 1.0, %v1021_v20 }
  0xca   :  { %v428_v22 = vadd.f32 %v789_v21, %v320_v19  ;;  %v214_v38 = vadd.f32 %v767_v31, %v755_v35  ;;  %v469_v31 = vld [vmem:[#allocation2 + $0x110] sm:$0xff] }
  0xcb   :  { %v266_v23 = vpop.permute.xlu1 %265  ;;  %v263_v24 = vpop.permute.xlu0 %262 }
  0xcc   :  { %882 = vmatmul.mubr.f32.gmra.mrb[4].mxu0 %v428_v22  ;;  %vm285_vm10 = vcmp.eq.s32.totalorder %v263_v24, %v1096_v17  ;;  %vm286_vm13 = vcmp.eq.s32.totalorder %v266_v23, %v1096_v17  ;;  %v464_v23 = vld [vmem:[#allocation2 + $0xe8] sm:$0xff]  ;;  %v465_v24 = vld [vmem:[#allocation2 + $0xf0] sm:$0xff] }
  0xcd   :  { %v778_v29 = vsel %vm285_vm10, 1.0, %v1021_v20  ;;  %v779_v36 = vsel %vm286_vm13, 1.0, %v1021_v20 }
  0xce   :  { %v321_v34 = vadd.f32 %v778_v29, %v213_v30  ;;  %v322_v42 = vadd.f32 %v779_v36, %v214_v38  ;;  %v468_v30 = vld [vmem:[#allocation2 + $0x108] sm:$0xff] }
  0xcf   :  { %v161_v27 = vpop.permute.xlu1 %160  ;;  %v65_v28 = vpop.permute.xlu0 %64  ;;  %v472_v36 = vld [vmem:[#allocation2 + $0x128] sm:$0xff] }
  0xd0   :  { %vm179_vm0 = vcmp.eq.s32.totalorder %v161_v27, %v1096_v17  ;;  %vm83_vm1 = vcmp.eq.s32.totalorder %v65_v28, %v1096_v17  ;;  %v961_v27 = vpack.c.bf16 %v465_v24, %v464_v23  ;;  %v467_v28 = vld [vmem:[#allocation2 + $0x100] sm:$0xff] }
  0xd1   :  { %v768_v47 = vsel %vm179_vm0, 1.0, %v1021_v20  ;;  %v756_v48 = vsel %vm83_vm1, 1.0, %v1021_v20  ;;  %v964_v29 = vpack.c.bf16 %v467_v28, %v466_v25  ;;  %vm1023_vm0 = vmmov 0  }
  0xd2   :  { %v215_v52 = vadd.f32 %v768_v47, %v756_v48  ;;  %962 = vmatpush3.bf16.msra.mxu1 %v961_v27  ;;  %925 = vmatprep.mubr.msk.f32.mxu1 %vm1023_vm0, %v1021_v20  ;;  %vm719_vm1 = vcmp.lt.s32.totalorder %v1096_v17, 4 }
  0xd3   :  { %v68_v32 = vpop.permute.xlu1 %67  ;;  %v371_v33 = vpop.permute.xlu0 %370  ;;  %963 = vmatprep.subr.bf16.mxu1 %v1022_v26 }
  0xd4   :  { %vm393_vm14 = vcmp.eq.s32.totalorder %v371_v33, %v1096_v17  ;;  %vm84_vm4 = vcmp.eq.s32.totalorder %v68_v32, %v1096_v17  ;;  %v967_v32 = vpack.c.bf16 %v469_v31, %v468_v30  ;;  %v470_v33 = vld [vmem:[#allocation2 + $0x118] sm:$0xff]  ;;  %v460_v30 = vld [vmem:[#allocation2 + $0xc8] sm:$0xff] }
  0xd5   :  { %v790_v37 = vsel %vm393_vm14, 1.0, %v1021_v20  ;;  %v757_v56 = vsel %vm84_vm4, 1.0, %v1021_v20  ;;  %vm739_vm4 = vcmp.eq.s32.totalorder %v1096_v17, 4 }
  0xd6   :  { %v429_v39 = vadd.f32 %v790_v37, %v321_v34  ;;  %965 = vmatpush3.bf16.msra.mxu1 %v964_v29  ;;  %v471_v34 = vld [vmem:[#allocation2 + $0x120] sm:$0xff]  ;;  %v473_v37 = vld [vmem:[#allocation2 + $0x130] sm:$0xff] }
  0xd7   :  { %v374_v40 = vpop.permute.xlu1 %373  ;;  %v164_v41 = vpop.permute.xlu0 %163  ;;  %966 = vmatprep.subr.bf16.mxu1 %v1022_v26  ;;  %v970_v35 = vpack.c.bf16 %v471_v34, %v470_v33  ;;  %v973_v38 = vpack.c.bf16 %v473_v37, %v472_v36  ;;  %v459_v29 = vld [vmem:[#allocation2 + $0xc0] sm:$0xff]  ;;  %v458_v33 = vld [vmem:[#allocation2 + $0xb8] sm:$0xff] }
  0xd8   :  { %vm394_vm15 = vcmp.eq.s32.totalorder %v374_v40, %v1096_v17  ;;  %884 = vmatprep.mubr.f32.mxu0 %v429_v39  ;;  %vm180_vm3 = vcmp.eq.s32.totalorder %v164_v41, %v1096_v17  ;;  %v474_v39 = vld [vmem:[#allocation2 + $0x138] sm:$0xff]  ;;  %v475_v40 = vld [vmem:[#allocation2 + $0x140] sm:$0xff] }
  0xd9   :  { %v791_v43 = vsel %vm394_vm15, 1.0, %v1021_v20  ;;  %v769_v53 = vsel %vm180_vm3, 1.0, %v1021_v20  ;;  %v976_v41 = vpack.c.bf16 %v475_v40, %v474_v39 }
  0xda   :  { %v430_v44 = vadd.f32 %v791_v43, %v322_v42  ;;  %v216_v59 = vadd.f32 %v769_v53, %v757_v56  ;;  %968 = vmatpush3.bf16.msra.mxu1 %v967_v32  ;;  %v476_v42 = vld [vmem:[#allocation2 + $0x148] sm:$0xff]  ;;  %v477_v43 = vld [vmem:[#allocation2 + $0x150] sm:$0xff] }
  0xdb   :  { %v272_v45 = vpop.permute.xlu1 %271  ;;  %v269_v46 = vpop.permute.xlu0 %268  ;;  %969 = vmatprep.subr.bf16.mxu1 %v1022_v26 }
  0xdc   :  { %885 = vmatmul.mubr.f32.gmra.mrb[6].mxu0 %v430_v44  ;;  %vm287_vm2 = vcmp.eq.s32.totalorder %v269_v46, %v1096_v17  ;;  %vm288_vm5 = vcmp.eq.s32.totalorder %v272_v45, %v1096_v17  ;;  %v979_v44 = vpack.c.bf16 %v477_v43, %v476_v42  ;;  %v478_v45 = vld [vmem:[#allocation2 + $0x158] sm:$0xff]  ;;  %v479_v46 = vld [vmem:[#allocation2 + $0x160] sm:$0xff] }
  0xdd   :  { %v780_v51 = vsel %vm287_vm2, 1.0, %v1021_v20  ;;  %v781_v57 = vsel %vm288_vm5, 1.0, %v1021_v20  ;;  %v982_v47 = vpack.c.bf16 %v479_v46, %v478_v45  ;;  %v463_v43 = vld [vmem:[#allocation2 + $0xe0] sm:$0xff]  ;;  %v462_v46 = vld [vmem:[#allocation2 + $0xd8] sm:$0xff] }
  0xde   :  { %v323_v58 = vadd.f32 %v780_v51, %v215_v52  ;;  %v324_v62 = vadd.f32 %v781_v57, %v216_v59  ;;  %971 = vmatpush3.bf16.msra.mxu1 %v970_v35  ;;  %v453_v57 = vld [vmem:[#allocation2 + $0x90] sm:$0xff] }
  0xdf   :  { %v167_v49 = vpop.permute.xlu1 %166  ;;  %v71_v50 = vpop.permute.xlu0 %70  ;;  %972 = vmatprep.subr.bf16.mxu1 %v1022_v26 }
  0xe0   :  { %vm181_vm7 = vcmp.eq.s32.totalorder %v167_v49, %v1096_v17  ;;  %vm85_vm8 = vcmp.eq.s32.totalorder %v71_v50, %v1096_v17  ;;  %v796_v50 = vld [vmem:[#allocation2 + $0x80] ss:$0 sm:$0xff] }
  0xe1   :  { %v770_v3 = vsel %vm181_vm7, 1.0, %v1021_v20  ;;  %v758_v4 = vsel %vm85_vm8, 1.0, %v1021_v20 }
  0xe2   :  { %v217_v11 = vadd.f32 %v770_v3, %v758_v4  ;;  %974 = vmatpush3.bf16.msra.mxu1 %v973_v38 }
  0xe3   :  { %v74_v54 = vpop.permute.xlu1 %73  ;;  %v377_v55 = vpop.permute.xlu0 %376  ;;  %975 = vmatprep.subr.bf16.mxu1 %v1022_v26 }
  0xe4   :  { %vm395_vm6 = vcmp.eq.s32.totalorder %v377_v55, %v1096_v17  ;;  %vm86_vm11 = vcmp.eq.s32.totalorder %v74_v54, %v1096_v17 }
  0xe5   :  { %v792_v60 = vsel %vm395_vm6, 1.0, %v1021_v20  ;;  %v759_v8 = vsel %vm86_vm11, 1.0, %v1021_v20 }
  0xe6   :  { %v431_v61 = vadd.f32 %v792_v60, %v323_v58  ;;  %977 = vmatpush3.bf16.msra.mxu1 %v976_v41  ;;  %v454_v58 = vld [vmem:[#allocation2 + $0x98] sm:$0xff] }
  0xe7   :  { %v380_v63 = vpop.permute.xlu1 %379  ;;  %v170_v0 = vpop.permute.xlu0 %169  ;;  %978 = vmatprep.subr.bf16.mxu1 %v1022_v26 }
  0xe8   :  { %vm396_vm9 = vcmp.eq.s32.totalorder %v380_v63, %v1096_v17  ;;  %vm182_vm10 = vcmp.eq.s32.totalorder %v170_v0, %v1096_v17  ;;  %887 = vmatprep.mubr.f32.mxu0 %v431_v61  ;;  %v452_v61 = vld [vmem:[#allocation2 + $0x88] sm:$0xff] }
  0xe9   :  { %v793_v1 = vsel %vm396_vm9, 1.0, %v1021_v20  ;;  %v771_v5 = vsel %vm182_vm10, 1.0, %v1021_v20 }
  0xea   :  { %v432_v2 = vadd.f32 %v793_v1, %v324_v62  ;;  %v218_v12 = vadd.f32 %v771_v5, %v759_v8  ;;  %980 = vmatpush3.bf16.msra.mxu1 %v979_v44 }
  0xeb   :  { %v278_v6 = vpop.permute.xlu1 %277  ;;  %v275_v7 = vpop.permute.xlu0 %274  ;;  %981 = vmatprep.subr.bf16.mxu1 %v1022_v26 }
  0xec   :  { %vm290_vm12 = vcmp.eq.s32.totalorder %v278_v6, %v1096_v17  ;;  %vm289_vm13 = vcmp.eq.s32.totalorder %v275_v7, %v1096_v17  ;;  %888 = vmatmul.mubr.f32.gmra.mrb[8].mxu0 %v432_v2  ;;  %v457_v6 = vld [vmem:[#allocation2 + $0xb0] sm:$0xff] }
  0xed   :  { %v783_v9 = vsel %vm290_vm12, 1.0, %v1021_v20  ;;  %v782_v10 = vsel %vm289_vm13, 1.0, %v1021_v20 }
  0xee   :  { %v326_v15 = vadd.f32 %v783_v9, %v218_v12  ;;  %v325_v16 = vadd.f32 %v782_v10, %v217_v11  ;;  %983 = vmatpush3.bf16.msra.mxu1 %v982_v47  ;;  %v456_v9 = vld [vmem:[#allocation2 + $0xa8] sm:$0xff]  ;;  %v455_v12 = vld [vmem:[#allocation2 + $0xa0] sm:$0xff] }
  0xef   :  { %v386_v13 = vpop.permute.xlu1 %385  ;;  %v383_v14 = vpop.permute.xlu0 %382 }
  0xf0   :  { %vm398_vm14 = vcmp.eq.s32.totalorder %v386_v13, %v1096_v17  ;;  %vm397_vm15 = vcmp.eq.s32.totalorder %v383_v14, %v1096_v17 }
  0xf1   :  { %v795_v18 = vsel %vm398_vm14, 1.0, %v1021_v20  ;;  %v794_v19 = vsel %vm397_vm15, 1.0, %v1021_v20 }
  0xf2   :  { %v434_v21 = vadd.f32 %v795_v18, %v326_v15  ;;  %v433_v22 = vadd.f32 %v794_v19, %v325_v16 }
  0xf4   :  { %890 = vmatprep.mubr.f32.mxu0 %v433_v22 }
  0xf5   :  { %891 = vmatmul.mubr.f32.gmra.mrb[10].mxu0 %v434_v21 }
 0x17f   :  { %v877_v48 = vpop.f32.mrb[0].mxu0 }
 0x180   :  { %v551_v49 = vpop.f32.mrb[1].mxu0  ;;  %v557_v51 = vadd.f32 %v877_v48, %v796_v50 }
 0x181   :  { %v552_v52 = vadd.f32 %v796_v50, %v551_v49  ;;  %v461_v49 = vld [vmem:[#allocation2 + $0xd0] sm:$0xff] }
 0x182   :  { %v611_v55 = vmax.f32 %v557_v51, 0.0 }
 0x183   :  { %v610_v59 = vmax.f32 %v552_v52, 0.0 }
 0x184   :  { %v623_v62 = vmul.f32 %v611_v55, %v453_v57 }
 0x185   :  { %v622_v0 = vmul.f32 %v610_v59, %v452_v61 }
 0x18f   :  { %v880_v53 = vpop.f32.mrb[2].mxu0 }
 0x190   :  { %v561_v54 = vpop.f32.mrb[3].mxu0  ;;  %v567_v2 = vadd.f32 %v880_v53, %v796_v50 }
 0x191   :  { %v562_v56 = vadd.f32 %v796_v50, %v561_v54 }
 0x192   :  { %v613_v10 = vmax.f32 %v567_v2, 0.0 }
 0x193   :  { %v612_v60 = vmax.f32 %v562_v56, 0.0 }
 0x194   :  { %v625_v15 = vmul.f32 %v613_v10, %v455_v12 }
 0x195   :  { %v624_v63 = vmul.f32 %v612_v60, %v454_v58  ;;  %v797_v58 = vld [vmem:[#allocation2 + $0x168] ss:$0 sm:$0xff] }
 0x197   :  { %v634_v1 = vmax.f32 %v623_v62, %v624_v63 }
 0x199   :  { %v635_v20 = vmax.f32 %v622_v0, %v634_v1 }
 0x19f   :  { %v883_v3 = vpop.f32.mrb[4].mxu0 }
 0x1a0   :  { %v577_v4 = vadd.f32 %v883_v3, %v796_v50  ;;  %v571_v5 = vpop.f32.mrb[5].mxu0 }
 0x1a1   :  { %v572_v7 = vadd.f32 %v796_v50, %v571_v5 }
 0x1a2   :  { %v615_v8 = vmax.f32 %v577_v4, 0.0 }
 0x1a3   :  { %v614_v11 = vmax.f32 %v572_v7, 0.0 }
 0x1a4   :  { %v627_v13 = vmul.f32 %v615_v8, %v457_v6 }
 0x1a5   :  { %v626_v14 = vmul.f32 %v614_v11, %v456_v9 }
 0x1a7   :  { %v636_v16 = vmax.f32 %v626_v14, %v627_v13 }
 0x1a9   :  { %v637_v18 = vmax.f32 %v625_v15, %v636_v16 }
 0x1ab   :  { %v638_v19 = vmax.f32 %v635_v20, %v637_v18 }
 0x1af   :  { %v886_v21 = vpop.f32.mrb[6].mxu0 }
 0x1b0   :  { %v581_v22 = vpop.f32.mrb[7].mxu0  ;;  %v587_v23 = vadd.f32 %v886_v21, %v796_v50 }
 0x1b1   :  { %v582_v24 = vadd.f32 %v796_v50, %v581_v22 }
 0x1b2   :  { %v617_v27 = vmax.f32 %v587_v23, 0.0 }
 0x1b3   :  { %v616_v31 = vmax.f32 %v582_v24, 0.0 }
 0x1b4   :  { %v629_v34 = vmul.f32 %v617_v27, %v459_v29 }
 0x1b5   :  { %v628_v36 = vmul.f32 %v616_v31, %v458_v33 }
 0x1bf   :  { %v889_v25 = vpop.f32.mrb[8].mxu0 }
 0x1c0   :  { %v591_v26 = vpop.f32.mrb[9].mxu0  ;;  %v597_v38 = vadd.f32 %v889_v25, %v796_v50 }
 0x1c1   :  { %v592_v28 = vadd.f32 %v796_v50, %v591_v26 }
 0x1c2   :  { %v619_v47 = vmax.f32 %v597_v38, 0.0 }
 0x1c3   :  { %v618_v32 = vmax.f32 %v592_v28, 0.0 }
 0x1c4   :  { %v631_v53 = vmul.f32 %v619_v47, %v461_v49 }
 0x1c5   :  { %v630_v35 = vmul.f32 %v618_v32, %v460_v30 }
 0x1c7   :  { %v639_v37 = vmax.f32 %v629_v34, %v630_v35 }
 0x1c8   :  { %v892_v39 = vpop.f32.mrb[10].mxu0 }
 0x1c9   :  { %v640_v40 = vmax.f32 %v628_v36, %v639_v37  ;;  %v607_v41 = vadd.f32 %v892_v39, %v796_v50  ;;  %v601_v42 = vpop.f32.mrb[11].mxu0 }
 0x1ca   :  { %v602_v44 = vadd.f32 %v796_v50, %v601_v42 }
 0x1cb   :  { %v621_v45 = vmax.f32 %v607_v41, 0.0 }
 0x1cc   :  { %v620_v48 = vmax.f32 %v602_v44, 0.0 }
 0x1cd   :  { %v633_v51 = vmul.f32 %v621_v45, %v463_v43 }
 0x1ce   :  { %v632_v52 = vmul.f32 %v620_v48, %v462_v46 }
 0x1d0   :  { %v641_v54 = vmax.f32 %v632_v52, %v633_v51 }
 0x1d2   :  { %v642_v55 = vmax.f32 %v631_v53, %v641_v54 }
 0x1d4   :  { %v643_v56 = vmax.f32 %v640_v40, %v642_v55 }
 0x1d6   :  { %v644_v57 = vmax.f32 %v638_v19, %v643_v56 }
 0x1d8   :  { %926 = vmatmul.mubr.f32.vlgmr.msra.gmra.mrb[0].mxu1 %v644_v57 }
 0x2ab   :  { %v715_v59 = vpop.f32.mrb[0].mxu1 }
 0x2ac   :  { %v716_v60 = vadd.f32 %v797_v58, %v715_v59  ;;  %v927_v61 = vpop.f32.mrb[1].mxu1 }
 0x2ae   :  { %v720_v50 = vsel %vm719_vm1, %v716_v60, -inf }
 0x2af   :  { %721 = vmax.xlane.f32.xlu0 %v720_v50 }
 0x33c   :  { %v722_v62 = vpop.xlane.xlu0 %721 }
 0x33d   :  { %vm723_vm2 = vcmp.ge.f32.partialorder %v720_v50, %v722_v62 }
 0x33e   :  { %v724_v63 = vsel %vm723_vm2, %v1096_v17, 128 }
 0x33f   :  { %v726_v0 = vshra.s32 %v724_v63, 16  ;;  %v725_v20 = vand.u32 65535, %v724_v63 }
 0x341   :  { %v728_v1 = vcvt.s32.f32 %v726_v0  ;;  %v727_v3 = vcvt.s32.f32 %v725_v20 }
 0x343   :  { %729 = vmin.xlane.f32.xlu1 %v728_v1 }
 0x3d0   :  { %v730_v2 = vpop.xlane.xlu1 %729 }
 0x3d1   :  { %vm731_vm3 = vcmp.eq.f32.partialorder %v728_v1, %v730_v2  ;;  %v736_v5 = vcvt.f32.s32 %v730_v2 }
 0x3d2   :  { %v732_v4 = vsel %vm731_vm3, %v727_v3, inf }
 0x3d3   :  { %733 = vmin.xlane.f32.xlu0 %v732_v4  ;;  %v737_v7 = vshll.u32 %v736_v5, 16 }
 0x460   :  { %v734_v6 = vpop.xlane.xlu0 %733 }
 0x461   :  { %v735_v8 = vcvt.f32.s32 %v734_v6 }
 0x463   :  { %v738_v9 = vadd.s32 %v737_v7, %v735_v8 }
 0x465   :  { %v740_v10 = vcvt.s32.f32 %v738_v9 }
 0x467   :  { %v741_v11 = vsel %vm739_vm4, %v740_v10, %v716_v60 }
 0x468   :  { %742 = vst [vmem:[%s1203_s2] sm:$0xff] %v741_v11 }
 0x469   :  { %747 = vsyncpa [#allocation3], 1 }

</bundles_post_ra>
